<compile_context>
chip_gen: v5e
topology: v5e:2x2
jax: 0.10.0
libtpu: 0.0.40
codegen_flags: <defaults>
</compile_context>

<pallas_src>
import functools

import jax
import jax.numpy as jnp
from jax import lax
from jax.experimental import pallas as pl
from jax.experimental.pallas import tpu as pltpu


def _round_up(n, m):
    return ((n + m - 1) // m) * m


def _cdiv(a, b):
    return -(-a // b)


def _vmem_limit_bytes():
    """Generation-aware scoped-VMEM ask: capacity minus ~1/8 headroom for compiler scratch."""
    cap = 64 << 20  # conservative fallback (v7x per-TC VMEM)
    try:
        cap = int(pltpu.get_tpu_info().vmem_capacity_bytes)
    except Exception:
        pass
    return max(cap - max(cap // 8, 8 << 20), 16 << 20)


# ----------------------------- kernels -----------------------------

def _resident_kernel(x_ref, w1_ref, b1_ref, w2_ref, b2_ref, o_ref, *, precision):
    """Both weight matrices resident in VMEM; one batch tile per grid step."""
    x = x_ref[...]                       # (tm, Dp) input dtype
    b1 = b1_ref[...]                     # (1, Dp) f32
    b2 = b2_ref[...]                     # (1, Dp) f32

    # Linear 1 on the MXU (bf16 or f32), f32 accumulation; bias + ReLU in f32.
    h = jnp.dot(x.astype(w1_ref.dtype), w1_ref[...],
                preferred_element_type=jnp.float32, precision=precision) + b1
    h = jnp.maximum(h, 0.0)

    # Dropout(p) in eval/inference mode == identity.

    # Linear 2, f32 accumulation.
    y = jnp.dot(h.astype(w2_ref.dtype), w2_ref[...],
                preferred_element_type=jnp.float32, precision=precision) + b2

    # Residual add in f32, store in output dtype.
    o_ref[...] = (x.astype(jnp.float32) + y).astype(o_ref.dtype)


def _stream_kernel(x_ref, w1_ref, b1_ref, w2_ref, b2_ref, o_ref, acc_ref, *, precision):
    """Hidden-dim streaming: grid axis 1 walks tk-wide blocks of the hidden dimension.

    W1 is tiled as (Dp, tk) column blocks, W2 as (tk, Dp) row blocks; the second-matmul
    result is accumulated in a (tm, Dp) f32 scratch, with bias2 + residual on the last step.
    """
    k = pl.program_id(1)

    @pl.when(k == 0)
    def _():
        acc_ref[...] = jnp.zeros_like(acc_ref)

    x = x_ref[...]                                           # (tm, Dp)
    h = jnp.dot(x.astype(w1_ref.dtype), w1_ref[...],         # (tm, tk)
                preferred_element_type=jnp.float32, precision=precision) + b1_ref[...]
    h = jnp.maximum(h, 0.0)
    acc_ref[...] += jnp.dot(h.astype(w2_ref.dtype), w2_ref[...],   # (tm, Dp)
                            preferred_element_type=jnp.float32, precision=precision)

    @pl.when(k == pl.num_programs(1) - 1)
    def _():
        o_ref[...] = (x.astype(jnp.float32) + acc_ref[...] + b2_ref[...]).astype(o_ref.dtype)


# ----------------------------- wrappers -----------------------------

def prepare_params(w1, b1, w2, b2, *, use_bf16=True):
    """One-time cast + (feature-dim) pad of the parameters. Call once, reuse across calls."""
    w1 = jnp.asarray(w1, jnp.float32)
    w2 = jnp.asarray(w2, jnp.float32)
    b1 = jnp.asarray(b1, jnp.float32).reshape(1, -1)
    b2 = jnp.asarray(b2, jnp.float32).reshape(1, -1)
    D = w1.shape[0]
    Dp = _round_up(D, 128)
    if Dp != D:
        w1 = jnp.pad(w1, ((0, Dp - D), (0, Dp - D)))
        w2 = jnp.pad(w2, ((0, Dp - D), (0, Dp - D)))
        b1 = jnp.pad(b1, ((0, 0), (0, Dp - D)))
        b2 = jnp.pad(b2, ((0, 0), (0, Dp - D)))
    wdt = jnp.bfloat16 if use_bf16 else jnp.float32
    return {"w1": w1.astype(wdt), "b1": b1, "w2": w2.astype(wdt), "b2": b2, "n_units": D}


def residual_block_apply(x, params, *, tm=None, tk=None, force_stream=False):
    """x: (B, n_units); params from prepare_params().  Returns x + Linear(ReLU(Linear(x)))."""
    D = params["n_units"]
    w1p, b1p, w2p, b2p = params["w1"], params["b1"], params["w2"], params["b2"]
    Dp = w1p.shape[0]
    B = x.shape[0]
    assert x.shape[1] == D, "feature dim mismatch"

    # Feature padding only when n_units is not lane-aligned; batch is never padded
    # (Pallas masks the ragged last batch tile; garbage rows are never written back).
    xk = x if Dp == D else jnp.pad(x, ((0, 0), (0, Dp - D)))

    # Batch tile: large enough to amortize per-step overhead; for B >= 16 cap at ceil(B/2)
    # so the "parallel" axis always has >= 2 steps (v7x shards it across both TensorCores).
    if tm is None:
        tm = 512 if Dp <= 2048 else 256
    if B < 16:
        tm_eff = B
    else:
        tm_eff = max(8, min(_round_up(tm, 8), _round_up(_cdiv(B, 2), 8)))
    n_bt = _cdiv(B, tm_eff)

    w_itemsize = jnp.dtype(w1p.dtype).itemsize
    x_itemsize = jnp.dtype(x.dtype).itemsize
    # bf16 weights -> default MXU precision; f32 weights -> exact (HIGHEST) path (validation).
    precision = None if w_itemsize == 2 else lax.Precision.HIGHEST

    vmem_limit = _vmem_limit_bytes()
    io_bytes = 2 * 2 * tm_eff * Dp * x_itemsize          # x/out tiles, double-buffered
    bias_bytes = 2 * 2 * Dp * 4
    resident_bytes = 2 * 2 * Dp * Dp * w_itemsize + io_bytes + bias_bytes + (2 << 20)

    cost = pl.CostEstimate(
        flops=2 * 2 * B * Dp * Dp,                       # two (Dp x Dp) matmuls over B rows
        transcendentals=0,
        bytes_accessed=2 * B * Dp * x_itemsize + 2 * Dp * Dp * w_itemsize + 2 * Dp * 4,
    )

    use_stream = force_stream or (resident_bytes > vmem_limit)

    if not use_stream:
        out = pl.pallas_call(
            functools.partial(_resident_kernel, precision=precision),
            out_shape=jax.ShapeDtypeStruct((B, Dp), x.dtype),
            grid_spec=pltpu.PrefetchScalarGridSpec(
                num_scalar_prefetch=0,
                grid=(n_bt,),
                in_specs=[
                    pl.BlockSpec((tm_eff, Dp), lambda i: (i, 0)),   # x tile (pipelined)
                    pl.BlockSpec((Dp, Dp), lambda i: (0, 0)),       # W1 (resident, const index)
                    pl.BlockSpec((1, Dp), lambda i: (0, 0)),        # b1
                    pl.BlockSpec((Dp, Dp), lambda i: (0, 0)),       # W2 (resident, const index)
                    pl.BlockSpec((1, Dp), lambda i: (0, 0)),        # b2
                ],
                out_specs=pl.BlockSpec((tm_eff, Dp), lambda i: (i, 0)),
            ),
            compiler_params=pltpu.CompilerParams(
                dimension_semantics=("parallel",),
                vmem_limit_bytes=int(min(max(resident_bytes + (8 << 20), 32 << 20), vmem_limit)),
            ),
            cost_estimate=cost,
        )(xk, w1p, b1p, w2p, b2p)
    else:
        # Hidden-dim streaming path (large Dp, or forced for testing).
        if tk is None:
            budget = vmem_limit - io_bytes - bias_bytes - tm_eff * Dp * 4 - (4 << 20)
            tk = max(128, min(Dp, (budget // (2 * 2 * Dp * w_itemsize)) // 128 * 128))
        tk = min(_round_up(tk, 128), Dp)
        n_kt = _cdiv(Dp, tk)

        out = pl.pallas_call(
            functools.partial(_stream_kernel, precision=precision),
            out_shape=jax.ShapeDtypeStruct((B, Dp), x.dtype),
            grid_spec=pltpu.PrefetchScalarGridSpec(
                num_scalar_prefetch=0,
                grid=(n_bt, n_kt),
                in_specs=[
                    pl.BlockSpec((tm_eff, Dp), lambda i, k: (i, 0)),  # x tile (constant over k)
                    pl.BlockSpec((Dp, tk), lambda i, k: (0, k)),      # W1 column block
                    pl.BlockSpec((1, tk), lambda i, k: (0, k)),       # b1 block
                    pl.BlockSpec((tk, Dp), lambda i, k: (k, 0)),      # W2 row block
                    pl.BlockSpec((1, Dp), lambda i, k: (0, 0)),       # b2 (resident)
                ],
                out_specs=pl.BlockSpec((tm_eff, Dp), lambda i, k: (i, 0)),
                scratch_shapes=[pltpu.VMEM((tm_eff, Dp), jnp.float32)],
            ),
            compiler_params=pltpu.CompilerParams(
                dimension_semantics=("parallel", "arbitrary"),
                vmem_limit_bytes=int(vmem_limit),
            ),
            cost_estimate=cost,
        )(xk, w1p, b1p, w2p, b2p)

    return out if Dp == D else out[:, :D]


def residual_block(x, w1, b1, w2, b2, *, use_bf16=True, **kw):
    """Convenience one-shot wrapper. For repeated calls, prepare_params() once and reuse."""
    return residual_block_apply(x, prepare_params(w1, b1, w2, b2, use_bf16=use_bf16), **kw)


def residual_block_ref(x, w1, b1, w2, b2):
    h = jnp.maximum(x @ w1 + jnp.reshape(b1, (1, -1)), 0.0)
    return x + (h @ w2 + jnp.reshape(b2, (1, -1)))


if __name__ == "__main__":
    key = jax.random.PRNGKey(0)

    # --- small shapes matching the module: batch=8, n_units=32 ---
    B, D = 8, 32
    kx, k1, k2, k3, k4, k5 = jax.random.split(key, 6)
    x = jax.random.normal(kx, (B, D), dtype=jnp.float32)
    bound = 1.0 / jnp.sqrt(D)
    w1 = jax.random.uniform(k1, (D, D), jnp.float32, -bound, bound)   # (in, out)
    b1 = jax.random.uniform(k2, (D,), jnp.float32, -bound, bound)
    w2 = jax.random.uniform(k3, (D, D), jnp.float32, -bound, bound)   # (in, out)
    b2 = jax.random.uniform(k4, (D,), jnp.float32, -bound, bound)

    ref = residual_block_ref(x, w1, b1, w2, b2)

    # Exact f32 path (precision=HIGHEST): validates kernel structure tightly.
    params_f32 = prepare_params(w1, b1, w2, b2, use_bf16=False)
    out_f32 = jax.block_until_ready(residual_block_apply(x, params_f32))
    assert out_f32.shape == (B, D)
    assert jnp.allclose(out_f32, ref, atol=1e-4, rtol=1e-4), "f32 path mismatch vs reference"

    # Default fast path: bf16 MXU matmuls, f32 accumulation (prepare once, apply).
    params_bf16 = prepare_params(w1, b1, w2, b2, use_bf16=True)
    out_bf16 = jax.block_until_ready(residual_block_apply(x, params_bf16))
    assert out_bf16.shape == (B, D)
    assert jnp.allclose(out_bf16, ref, atol=5e-2, rtol=5e-2), "bf16 path mismatch vs reference"

    # Hidden-dim streaming path (used automatically for large D; forced here at small D,
    # lane-aligned so no feature padding and no output slice): D=256, tk=128 -> 2 k-steps.
    D2 = 256
    x2 = jax.random.normal(k5, (B, D2), dtype=jnp.float32)
    kk = jax.random.split(jax.random.PRNGKey(1), 4)
    bnd2 = 1.0 / jnp.sqrt(D2)
    w1b = jax.random.uniform(kk[0], (D2, D2), jnp.float32, -bnd2, bnd2)
    b1b = jax.random.uniform(kk[1], (D2,), jnp.float32, -bnd2, bnd2)
    w2b = jax.random.uniform(kk[2], (D2, D2), jnp.float32, -bnd2, bnd2)
    b2b = jax.random.uniform(kk[3], (D2,), jnp.float32, -bnd2, bnd2)
    ref2 = residual_block_ref(x2, w1b, b1b, w2b, b2b)
    out_stream = jax.block_until_ready(
        residual_block(x2, w1b, b1b, w2b, b2b, use_bf16=False, force_stream=True, tk=128))
    assert out_stream.shape == (B, D2)
    assert jnp.allclose(out_stream, ref2, atol=1e-4, rtol=1e-4), "streaming path mismatch"

    print("KERNEL_OK")
</pallas_src>

<mosaic_0001>
module attributes {stable_mosaic.version = 11 : i64} {
  func.func @_resident_kernel(%arg0: i32, %arg1: memref<8x128xf32, #tpu.memory_space<vmem>>, %arg2: memref<128x128xf32, #tpu.memory_space<vmem>>, %arg3: memref<1x128xf32, #tpu.memory_space<vmem>>, %arg4: memref<128x128xf32, #tpu.memory_space<vmem>>, %arg5: memref<1x128xf32, #tpu.memory_space<vmem>>, %arg6: memref<8x128xf32, #tpu.memory_space<vmem>>) attributes {dimension_semantics = [#tpu.dimension_semantics<parallel>], iteration_bounds = array<i64: 1>, scalar_prefetch = 0 : i64, scratch_operands = 0 : i64, tpu.core_type = #tpu.core_type<tc>, window_params = [{transform_indices = @transform_0, window_bounds = array<i64: 8, 128>}, {pipeline_mode = #tpu.pipeline_mode<synchronous>, transform_indices = @transform_1, window_bounds = array<i64: 128, 128>}, {pipeline_mode = #tpu.pipeline_mode<synchronous>, transform_indices = @transform_2, window_bounds = array<i64: 1, 128>}, {pipeline_mode = #tpu.pipeline_mode<synchronous>, transform_indices = @transform_3, window_bounds = array<i64: 128, 128>}, {pipeline_mode = #tpu.pipeline_mode<synchronous>, transform_indices = @transform_4, window_bounds = array<i64: 1, 128>}, {transform_indices = @transform_5, window_bounds = array<i64: 8, 128>}]} {
    %c0 = arith.constant 0 : index
    %c0_0 = arith.constant 0 : index
    %0 = vector.load %arg1[%c0, %c0_0] : memref<8x128xf32, #tpu.memory_space<vmem>>, vector<8x128xf32>
    %c0_1 = arith.constant 0 : index
    %c0_2 = arith.constant 0 : index
    %1 = vector.load %arg3[%c0_1, %c0_2] : memref<1x128xf32, #tpu.memory_space<vmem>>, vector<1x128xf32>
    %c0_3 = arith.constant 0 : index
    %c0_4 = arith.constant 0 : index
    %2 = vector.load %arg5[%c0_3, %c0_4] : memref<1x128xf32, #tpu.memory_space<vmem>>, vector<1x128xf32>
    %c0_5 = arith.constant 0 : index
    %c0_6 = arith.constant 0 : index
    %3 = vector.load %arg2[%c0_5, %c0_6] : memref<128x128xf32, #tpu.memory_space<vmem>>, vector<128x128xf32>
    %cst = arith.constant dense<0.000000e+00> : vector<8x128xf32>
    %4 = tpu.matmul %0, %3, %cst {dimension_numbers = #tpu.dot_dimension_numbers<[1], [0], [0], [1], [0, 0, 1, 1], [], []>, precision = #tpu.contract_precision<fp32>} : vector<8x128xf32>, vector<128x128xf32>, vector<8x128xf32> -> vector<8x128xf32>
    %5 = vector.broadcast %1 : vector<1x128xf32> to vector<8x128xf32>
    %6 = arith.addf %4, %5 : vector<8x128xf32>
    %cst_7 = arith.constant 0.000000e+00 : f32
    %7 = vector.broadcast %cst_7 : f32 to vector<8x128xf32>
    %8 = arith.maximumf %6, %7 : vector<8x128xf32>
    %c0_8 = arith.constant 0 : index
    %c0_9 = arith.constant 0 : index
    %9 = vector.load %arg4[%c0_8, %c0_9] : memref<128x128xf32, #tpu.memory_space<vmem>>, vector<128x128xf32>
    %cst_10 = arith.constant dense<0.000000e+00> : vector<8x128xf32>
    %10 = tpu.matmul %8, %9, %cst_10 {dimension_numbers = #tpu.dot_dimension_numbers<[1], [0], [0], [1], [0, 0, 1, 1], [], []>, precision = #tpu.contract_precision<fp32>} : vector<8x128xf32>, vector<128x128xf32>, vector<8x128xf32> -> vector<8x128xf32>
    %11 = vector.broadcast %2 : vector<1x128xf32> to vector<8x128xf32>
    %12 = arith.addf %10, %11 : vector<8x128xf32>
    %13 = arith.addf %0, %12 : vector<8x128xf32>
    %c0_11 = arith.constant 0 : index
    %c0_12 = arith.constant 0 : index
    %14 = vector.load %arg6[%c0_11, %c0_12] : memref<8x128xf32, #tpu.memory_space<vmem>>, vector<8x128xf32>
    tpu.vector_store %arg6[%c0_11, %c0_12], %13 {strides = array<i32>} : memref<8x128xf32, #tpu.memory_space<vmem>>, vector<8x128xf32>,
    return
  }
  func.func @transform_0(%arg0: i32) -> (i32, i32) {
    %c0_i32 = arith.constant 0 : i32
    %c0_i32_0 = arith.constant 0 : i32
    return %arg0, %c0_i32 : i32, i32
  }
  func.func @transform_1(%arg0: i32) -> (i32, i32) {
    %c0_i32 = arith.constant 0 : i32
    %c0_i32_0 = arith.constant 0 : i32
    %c0_i32_1 = arith.constant 0 : i32
    return %c0_i32, %c0_i32_0 : i32, i32
  }
  func.func @transform_2(%arg0: i32) -> (i32, i32) {
    %c0_i32 = arith.constant 0 : i32
    %c0_i32_0 = arith.constant 0 : i32
    %c0_i32_1 = arith.constant 0 : i32
    return %c0_i32, %c0_i32_0 : i32, i32
  }
  func.func @transform_3(%arg0: i32) -> (i32, i32) {
    %c0_i32 = arith.constant 0 : i32
    %c0_i32_0 = arith.constant 0 : i32
    %c0_i32_1 = arith.constant 0 : i32
    return %c0_i32, %c0_i32_0 : i32, i32
  }
  func.func @transform_4(%arg0: i32) -> (i32, i32) {
    %c0_i32 = arith.constant 0 : i32
    %c0_i32_0 = arith.constant 0 : i32
    %c0_i32_1 = arith.constant 0 : i32
    return %c0_i32, %c0_i32_0 : i32, i32
  }
  func.func @transform_5(%arg0: i32) -> (i32, i32) {
    %c0_i32 = arith.constant 0 : i32
    %c0_i32_0 = arith.constant 0 : i32
    return %arg0, %c0_i32 : i32, i32
  }
}

</mosaic_0001>

<bundles_post_ra>
// kernel: tpu_custom_call.1
= control target key start
LH: loop header
LB: loop body
LE: loop exit
PB: predicated region body
PF: predicated region fallthrough
CT: control target
= control target key end

     0   :  { %10 = vsyncpa [#allocation3], 0  ;;  %s1465_s0 = inlined_call_operand.hbm [shape: f32[8,128], index: 0, kind: input, shape index: {}]   ;;  %s1466_s1 = inlined_call_operand.hbm [shape: f32[128,128], index: 1, kind: input, shape index: {}]   ;;  %s1467_s2 = inlined_call_operand.vmem [shape: f32[1,128], index: 2, kind: input, shape index: {}]   ;;  %s1468_s3 = inlined_call_operand.hbm [shape: f32[128,128], index: 3, kind: input, shape index: {}]   ;;  %s1469_s4 = inlined_call_operand.vmem [shape: f32[1,128], index: 4, kind: input, shape index: {}]   ;;  %s1470_s5 = inlined_call_operand.hbm [shape: f32[8,128], index: 5, kind: output, shape index: {}]  }
   0x1   :  { %11 = vsyncpa [#allocation6], 0  ;;  %s28_s20 = sshll.u32 %s1466_s1, 4  ;;  %s29_s20 = int_to_ptr.hbm [resolvable:$true] %s28_s20 }
   0x2   :  { %12 = vsyncpa [#allocation4], 0  ;;  %s920_s21 = smov [#allocation5]   ;;  %s18_s25 = sshll.u32 %s1465_s0, 4  ;;  %s19_s25 = int_to_ptr.hbm [resolvable:$true] %s18_s25 }
   0x3   :  { %s30_s22 = sshll.u32 %s920_s21, 4  ;;  %s921_s26 = smov 128   ;;  %s31_s22 = int_to_ptr.vmem [resolvable:$true] %s30_s22 }
   0x4   :  { %s922_s27 = smov 8   ;;  %s923_s28 = smov [#allocation2]  }
   0x5   :  { %36 = dma.hbm_to_vmem [thread:$0]  %s29_s20, 2048, %s31_s22, [#allocation6], %s921_s26, %s921_s26, %s922_s27  }
   0x6   :  { %s20_s29 = sshll.u32 %s923_s28, 4  ;;  %s43_s7 = sshll.u32 %s1468_s3, 4  ;;  %s21_s29 = int_to_ptr.vmem [resolvable:$true] %s20_s29  ;;  %s44_s7 = int_to_ptr.hbm [resolvable:$true] %s43_s7 }
   0x7   :  { %23 = dma.hbm_to_vmem [thread:$0]  %s19_s25, 128, %s21_s29, [#allocation3]  }
   0x8   :  { %s924_s1 = smov [#allocation7]  }
   0x9   :  { %s45_s8 = sshll.u32 %s924_s1, 4  ;;  %s46_s8 = int_to_ptr.vmem [resolvable:$true] %s45_s8 }
   0xa   :  { %51 = dma.hbm_to_vmem [thread:$0]  %s44_s7, 2048, %s46_s8, [#allocation6], %s921_s26, %s921_s26, %s922_s27  }
   0xb   :  { %914 = dma.done.wait [#allocation3], 128  }
   0xc   :  { %915 = vsyncadd [#allocation3], 4294967168 }
   0xd   :  { %916 = dma.done.wait [#allocation6], 4096  }
   0xe   :  { %917 = vsyncadd [#allocation6], 4294963200  ;;  %v84_v0 = vld [vmem:[#allocation5 + $0x78] sm:$0xff]  ;;  %v83_v1 = vld [vmem:[#allocation5 + $0x70] sm:$0xff]  ;;  %s925_s10 = smov [#allocation8]   ;;  %s799_s14 = sshll.u32 %s1470_s5, 4  ;;  %s800_s14 = int_to_ptr.hbm [resolvable:$true] %s799_s14 }
   0xf   :  { %v82_v2 = vld [vmem:[#allocation5 + $0x68] sm:$0xff]  ;;  %v965_v3 = vand.u32 4294901760, %v84_v0  ;;  %v967_v4 = vand.u32 4294901760, %v83_v1  ;;  %v81_v6 = vld [vmem:[#allocation5 + $0x60] sm:$0xff]  ;;  %v80_v7 = vld [vmem:[#allocation5 + $0x58] sm:$0xff]  ;;  %s797_s11 = sshll.u32 %s925_s10, 4  ;;  %s798_s11 = int_to_ptr.vmem [resolvable:$true] %s797_s11 }
  0x10   :  { %v969_v5 = vand.u32 4294901760, %v82_v2  ;;  %v79_v8 = vld [vmem:[#allocation5 + $0x50] sm:$0xff]  ;;  %v971_v9 = vand.u32 4294901760, %v81_v6  ;;  %v973_v10 = vand.u32 4294901760, %v80_v7  ;;  %v78_v12 = vld [vmem:[#allocation5 + $0x48] sm:$0xff]  ;;  %v77_v13 = vld [vmem:[#allocation5 + $0x40] sm:$0xff] }
  0x11   :  { %v975_v11 = vand.u32 4294901760, %v79_v8  ;;  %89 = vmatpush.msra.mxu0 %v965_v3  ;;  %v979_v14 = vsub.f32 %v84_v0, %v965_v3  ;;  %v982_v15 = vsub.f32 %v83_v1, %v967_v4  ;;  %v987_v17 = vand.u32 4294901760, %v78_v12  ;;  %285 = vmatpush.msra.mxu3 %v965_v3  ;;  %v76_v21 = vld [vmem:[#allocation5 + $0x38] sm:$0xff]  ;;  %v75_v34 = vld [vmem:[#allocation5 + $0x30] sm:$0xff]  ;;  %v74_v35 = vld [vmem:[#allocation5 + $0x28] sm:$0xff] }
  0x12   :  { %v985_v16 = vsub.f32 %v82_v2, %v969_v5  ;;  %v991_v18 = vsub.f32 %v81_v6, %v971_v9  ;;  %v994_v19 = vsub.f32 %v80_v7, %v973_v10  ;;  %v996_v20 = vand.u32 4294901760, %v77_v13  ;;  %v73_v42 = vld [vmem:[#allocation5 + $0x20] sm:$0xff]  ;;  %v72_v47 = vld [vmem:[#allocation5 + $0x18] sm:$0xff]  ;;  %v71_v53 = vld [vmem:[#allocation5 + $0x10] sm:$0xff] }
  0x13   :  { %91 = vmatpush.msra.mxu0 %v967_v4  ;;  %v131_v22 = vand.u32 4294901760, %v979_v14  ;;  %v137_v23 = vand.u32 4294901760, %v982_v15  ;;  %v1003_v25 = vsub.f32 %v79_v8, %v975_v11  ;;  %232 = vmatpush.msra.mxu2 %v979_v14  ;;  %v1009_v28 = vsub.f32 %v78_v12, %v987_v17  ;;  %v70_v61 = vld [vmem:[#allocation5 + $0x8] sm:$0xff]  ;;  %v69_v2 = vld [vmem:[#allocation5] sm:$0xff] }
  0x14   :  { %v143_v24 = vand.u32 4294901760, %v985_v16  ;;  %v149_v26 = vand.u32 4294901760, %v991_v18  ;;  %v155_v27 = vand.u32 4294901760, %v994_v19  ;;  %287 = vmatpush.msra.mxu3 %v967_v4  ;;  %v1022_v32 = vand.u32 4294901760, %v76_v21 }
  0x15   :  { %v132_v29 = vsub.f32 %v979_v14, %v131_v22  ;;  %93 = vmatpush.msra.mxu0 %v969_v5  ;;  %v138_v30 = vsub.f32 %v982_v15, %v137_v23  ;;  %235 = vmatpush.msra.mxu2 %v982_v15  ;;  %v1026_v33 = vsub.f32 %v77_v13, %v996_v20  ;;  %v161_v39 = vand.u32 4294901760, %v1003_v25  ;;  %v445_v14 = vld [vmem:[#allocation7 + $0x78] sm:$0xff] }
  0x16   :  { %v144_v31 = vsub.f32 %v985_v16, %v143_v24  ;;  %289 = vmatpush.msra.mxu3 %v969_v5  ;;  %v150_v38 = vsub.f32 %v991_v18, %v149_v26  ;;  %v156_v40 = vsub.f32 %v994_v19, %v155_v27  ;;  %v167_v41 = vand.u32 4294901760, %v1009_v28 }
  0x17   :  { %v133_v36 = vand.u32 4294901760, %v132_v29  ;;  %v139_v37 = vand.u32 4294901760, %v138_v30  ;;  %95 = vmatpush.msra.mxu0 %v971_v9  ;;  %238 = vmatpush.msra.mxu2 %v985_v16  ;;  %v1041_v44 = vand.u32 4294901760, %v75_v34  ;;  %v1044_v45 = vsub.f32 %v76_v21, %v1022_v32  ;;  %v1101_v29 = vld [vmem:[#allocation2] sm:$0xff] }
  0x18   :  { %291 = vmatpush.msra.mxu3 %v971_v9  ;;  %v145_v43 = vand.u32 4294901760, %v144_v31  ;;  %v1046_v46 = vand.u32 4294901760, %v74_v35  ;;  %v173_v48 = vand.u32 4294901760, %v1026_v33  ;;  %v151_v49 = vand.u32 4294901760, %v150_v38 }
  0x19   :  { %134 = vmatpush.msra.mxu1 %v133_v36  ;;  %97 = vmatpush.msra.mxu0 %v973_v10  ;;  %v162_v50 = vsub.f32 %v1003_v25, %v161_v39  ;;  %v1056_v51 = vsub.f32 %v75_v34, %v1041_v44  ;;  %v1058_v52 = vand.u32 4294901760, %v73_v42  ;;  %v1060_v54 = vand.u32 4294901760, %v72_v47 }
  0x1a   :  { %241 = vmatpush.msra.mxu2 %v991_v18  ;;  %293 = vmatpush.msra.mxu3 %v973_v10  ;;  %v157_v55 = vand.u32 4294901760, %v156_v40  ;;  %v168_v56 = vsub.f32 %v1009_v28, %v167_v41  ;;  %v179_v57 = vand.u32 4294901760, %v1044_v45  ;;  %v1070_v58 = vsub.f32 %v74_v35, %v1046_v46 }
  0x1b   :  { %140 = vmatpush.msra.mxu1 %v139_v37  ;;  %99 = vmatpush.msra.mxu0 %v975_v11  ;;  %v174_v59 = vsub.f32 %v1026_v33, %v173_v48  ;;  %v1075_v60 = vand.u32 4294901760, %v71_v53  ;;  %v163_v62 = vand.u32 4294901760, %v162_v50  ;;  %v185_v63 = vand.u32 4294901760, %v1056_v51 }
  0x1c   :  { %244 = vmatpush.msra.mxu2 %v994_v19  ;;  %295 = vmatpush.msra.mxu3 %v975_v11  ;;  %v1082_v0 = vsub.f32 %v73_v42, %v1058_v52  ;;  %v1085_v1 = vsub.f32 %v72_v47, %v1060_v54  ;;  %v169_v6 = vand.u32 4294901760, %v168_v56  ;;  %v180_v7 = vsub.f32 %v1044_v45, %v179_v57  ;;  %v438_v19 = vld [vmem:[#allocation7 + $0x40] sm:$0xff] }
  0x1d   :  { %146 = vmatpush.msra.mxu1 %v145_v43  ;;  %101 = vmatpush.msra.mxu0 %v987_v17  ;;  %v191_v8 = vand.u32 4294901760, %v1070_v58  ;;  %v1094_v12 = vand.u32 4294901760, %v70_v61  ;;  %v175_v13 = vand.u32 4294901760, %v174_v59  ;;  %v1097_v21 = vsub.f32 %v71_v53, %v1075_v60 }
  0x1e   :  { %247 = vmatpush.msra.mxu2 %v1003_v25  ;;  %297 = vmatpush.msra.mxu3 %v987_v17  ;;  %v186_v30 = vsub.f32 %v1056_v51, %v185_v63  ;;  %v197_v31 = vand.u32 4294901760, %v1082_v0  ;;  %v1108_v34 = vand.u32 4294901760, %v69_v2  ;;  %v1111_v35 = vand.u32 4294901760, %v1101_v29 }
  0x1f   :  { %152 = vmatpush.msra.mxu1 %v151_v49  ;;  %103 = vmatpush.msra.mxu0 %v996_v20  ;;  %v203_v36 = vand.u32 4294901760, %v1085_v1  ;;  %v181_v37 = vand.u32 4294901760, %v180_v7  ;;  %v192_v38 = vsub.f32 %v1070_v58, %v191_v8  ;;  %v1121_v40 = vsub.f32 %v70_v61, %v1094_v12 }
  0x20   :  { %250 = vmatpush.msra.mxu2 %v1009_v28  ;;  %299 = vmatpush.msra.mxu3 %v996_v20  ;;  %v121_v42 = vsub.f32 %v1101_v29, %v1111_v35  ;;  %v187_v43 = vand.u32 4294901760, %v186_v30  ;;  %v198_v47 = vsub.f32 %v1082_v0, %v197_v31  ;;  %v209_v49 = vand.u32 4294901760, %v1097_v21 }
  0x21   :  { %158 = vmatpush.msra.mxu1 %v157_v55  ;;  %105 = vmatpush.msra.mxu0 %v1022_v32  ;;  %v1133_v50 = vsub.f32 %v69_v2, %v1108_v34  ;;  %v193_v53 = vand.u32 4294901760, %v192_v38  ;;  %v204_v55 = vsub.f32 %v1085_v1, %v203_v36  ;;  %v215_v56 = vand.u32 4294901760, %v1121_v40 }
  0x22   :  { %253 = vmatpush.msra.mxu2 %v1026_v33  ;;  %301 = vmatpush.msra.mxu3 %v1022_v32  ;;  %v122_v59 = vand.u32 4294901760, %v121_v42  ;;  %v199_v61 = vand.u32 4294901760, %v198_v47  ;;  %v1175_v15 = vand.u32 4294901760, %v445_v14  ;;  %v437_v33 = vld [vmem:[#allocation7 + $0x38] sm:$0xff] }
  0x23   :  { %164 = vmatpush.msra.mxu1 %v163_v62  ;;  %107 = vmatpush.msra.mxu0 %v1041_v44  ;;  %v210_v62 = vsub.f32 %v1097_v21, %v209_v49  ;;  %v221_v2 = vand.u32 4294901760, %v1133_v50  ;;  %v216_v7 = vsub.f32 %v1121_v40, %v215_v56 }
  0x24   :  { %256 = vmatpush.msra.mxu2 %v1044_v45  ;;  %303 = vmatpush.msra.mxu3 %v1041_v44  ;;  %v1254_v45 = vand.u32 4294901760, %v437_v33 }
  0x25   :  { %170 = vmatpush.msra.mxu1 %v169_v6  ;;  %109 = vmatpush.msra.mxu0 %v1046_v46  ;;  %v205_v6 = vand.u32 4294901760, %v204_v55  ;;  %v211_v30 = vand.u32 4294901760, %v210_v62  ;;  %v217_v38 = vand.u32 4294901760, %v216_v7  ;;  %v440_v55 = vld [vmem:[#allocation7 + $0x50] sm:$0xff] }
  0x26   :  { %259 = vmatpush.msra.mxu2 %v1056_v51  ;;  %305 = vmatpush.msra.mxu3 %v1046_v46  ;;  %v1269_v51 = vsub.f32 %v437_v33, %v1254_v45 }
  0x27   :  { %176 = vmatpush.msra.mxu1 %v175_v13  ;;  %111 = vmatpush.msra.mxu0 %v1058_v52  ;;  %v123_v13 = vsub.f32 %v121_v42, %v122_v59 }
  0x28   :  { %262 = vmatpush.msra.mxu2 %v1070_v58  ;;  %307 = vmatpush.msra.mxu3 %v1058_v52 }
  0x29   :  { %182 = vmatpush.msra.mxu1 %v181_v37  ;;  %113 = vmatpush.msra.mxu0 %v1060_v54  ;;  %v222_v37 = vsub.f32 %v1133_v50, %v221_v2 }
  0x2a   :  { %265 = vmatpush.msra.mxu2 %v1082_v0  ;;  %309 = vmatpush.msra.mxu3 %v1060_v54  ;;  %v431_v0 = vld [vmem:[#allocation7 + $0x8] sm:$0xff] }
  0x2b   :  { %188 = vmatpush.msra.mxu1 %v187_v43  ;;  %115 = vmatpush.msra.mxu0 %v1075_v60  ;;  %v124_v43 = vand.u32 4294901760, %v123_v13  ;;  %v223_v47 = vand.u32 4294901760, %v222_v37 }
  0x2c   :  { %268 = vmatpush.msra.mxu2 %v1085_v1  ;;  %311 = vmatpush.msra.mxu3 %v1075_v60  ;;  %v430_v1 = vld [vmem:[#allocation7] sm:$0xff] }
  0x2d   :  { %194 = vmatpush.msra.mxu1 %v193_v53  ;;  %117 = vmatpush.msra.mxu0 %v1094_v12  ;;  %v443_v53 = vld [vmem:[#allocation7 + $0x68] sm:$0xff] }
  0x2e   :  { %271 = vmatpush.msra.mxu2 %v1097_v21  ;;  %313 = vmatpush.msra.mxu3 %v1094_v12  ;;  %v1179_v16 = vand.u32 4294901760, %v443_v53 }
  0x2f   :  { %200 = vmatpush.msra.mxu1 %v199_v61  ;;  %119 = vmatpush.msra.mxu0 %v1108_v34 }
  0x30   :  { %274 = vmatpush.msra.mxu2 %v1121_v40  ;;  %315 = vmatpush.msra.mxu3 %v1108_v34  ;;  %v1198_v62 = vsub.f32 %v443_v53, %v1179_v16 }
  0x31   :  { %326 = vmatpush.msrb.mxu0 %v131_v22  ;;  %206 = vmatpush.msra.mxu1 %v205_v6  ;;  %v444_v22 = vld [vmem:[#allocation7 + $0x70] sm:$0xff] }
  0x32   :  { %277 = vmatpush.msra.mxu2 %v1133_v50  ;;  %319 = vmatmul.f32.vlgmr.msra.gmra.mxu3 %v122_v59  ;;  %v1186_v59 = vand.u32 4294901760, %v440_v55  ;;  %v504_v13 = vand.u32 4294901760, %v1198_v62 }
  0x33   :  { %330 = vmatpush.msrb.mxu0 %v137_v23  ;;  %212 = vmatpush.msra.mxu1 %v211_v30  ;;  %v1177_v23 = vand.u32 4294901760, %v444_v22  ;;  %v1215_v30 = vand.u32 4294901760, %v438_v19 }
  0x34   :  { %280 = vmatmul.f32.vlgmr.msra.gmra.mxu2 %v121_v42  ;;  %125 = vmatmul.f32.vlgmr.msra.gmra.mxu0 %v124_v43  ;;  %v441_v42 = vld [vmem:[#allocation7 + $0x58] sm:$0xff]  ;;  %v505_v43 = vsub.f32 %v1198_v62, %v504_v13 }
  0x35   :  { %334 = vmatpush.msrb.mxu0 %v143_v24  ;;  %218 = vmatpush.msra.mxu1 %v217_v38  ;;  %v442_v24 = vld [vmem:[#allocation7 + $0x60] sm:$0xff]  ;;  %v1195_v61 = vsub.f32 %v444_v22, %v1177_v23  ;;  %v1220_v38 = vsub.f32 %v440_v55, %v1186_v59  ;;  %v435_v22 = vld [vmem:[#allocation7 + $0x28] sm:$0xff] }
  0x36   :  { %v1182_v18 = vand.u32 4294901760, %v442_v24  ;;  %450 = vmatpush.msrb.mxu2 %v1175_v15  ;;  %v434_v55 = vld [vmem:[#allocation7 + $0x20] sm:$0xff] }
  0x37   :  { %338 = vmatpush.msrb.mxu0 %v149_v26  ;;  %224 = vmatpush.msra.mxu1 %v223_v47  ;;  %v1184_v26 = vand.u32 4294901760, %v441_v42 }
  0x38   :  { %226 = vmatmul.f32.vlgmr.msra.gmra.mxu1 %v1111_v35  ;;  %v1203_v7 = vsub.f32 %v442_v24, %v1182_v18  ;;  %452 = vmatpush.msrb.mxu2 %v1177_v23 }
  0x39   :  { %393 = vmatpush.msrb.mxu1 %v965_v3  ;;  %342 = vmatpush.msrb.mxu0 %v155_v27  ;;  %v439_v3 = vld [vmem:[#allocation7 + $0x48] sm:$0xff]  ;;  %v1192_v27 = vsub.f32 %v445_v14, %v1175_v15  ;;  %v1243_v14 = vsub.f32 %v438_v19, %v1215_v30 }
  0x3a   :  { %v1200_v6 = vand.u32 4294901760, %v439_v3  ;;  %v510_v37 = vand.u32 4294901760, %v1203_v7  ;;  %454 = vmatpush.msrb.mxu2 %v1179_v16 }
  0x3b   :  { %395 = vmatpush.msrb.mxu1 %v967_v4  ;;  %346 = vmatpush.msrb.mxu0 %v161_v39  ;;  %v1207_v4 = vsub.f32 %v441_v42, %v1184_v26  ;;  %v492_v25 = vand.u32 4294901760, %v1192_v27  ;;  %v498_v39 = vand.u32 4294901760, %v1195_v61  ;;  %v522_v42 = vand.u32 4294901760, %v1220_v38 }
  0x3c   :  { %v511_v24 = vsub.f32 %v1203_v7, %v510_v37  ;;  %456 = vmatpush.msrb.mxu2 %v1182_v18 }
  0x3d   :  { %397 = vmatpush.msrb.mxu1 %v969_v5  ;;  %350 = vmatpush.msrb.mxu0 %v167_v41  ;;  %v493_v5 = vsub.f32 %v1192_v27, %v492_v25  ;;  %v499_v28 = vsub.f32 %v1195_v61, %v498_v39  ;;  %v1232_v41 = vsub.f32 %v439_v3, %v1200_v6  ;;  %v506_v3 = vand.u32 4294901760, %v505_v43 }
  0x3e   :  { %458 = vmatpush.msrb.mxu2 %v1184_v26  ;;  %v523_v43 = vsub.f32 %v1220_v38, %v522_v42 }
  0x3f   :  { %399 = vmatpush.msrb.mxu1 %v971_v9  ;;  %354 = vmatpush.msrb.mxu0 %v173_v48  ;;  %v516_v9 = vand.u32 4294901760, %v1207_v4  ;;  %v436_v48 = vld [vmem:[#allocation7 + $0x30] sm:$0xff]  ;;  %v494_v47 = vand.u32 4294901760, %v493_v5  ;;  %v500_v53 = vand.u32 4294901760, %v499_v28  ;;  %v1262_v5 = vand.u32 4294901760, %v435_v22 }
  0x40   :  { %v512_v28 = vand.u32 4294901760, %v511_v24  ;;  %460 = vmatpush.msrb.mxu2 %v1186_v59 }
  0x41   :  { %401 = vmatpush.msrb.mxu1 %v973_v10  ;;  %358 = vmatpush.msrb.mxu0 %v179_v57  ;;  %v528_v10 = vand.u32 4294901760, %v1232_v41  ;;  %v1256_v57 = vand.u32 4294901760, %v436_v48  ;;  %v517_v19 = vsub.f32 %v1207_v4, %v516_v9 }
  0x42   :  { %495 = vmatpush.msrb.mxu3 %v494_v47  ;;  %462 = vmatpush.msrb.mxu2 %v1200_v6 }
  0x43   :  { %403 = vmatpush.msrb.mxu1 %v975_v11  ;;  %362 = vmatpush.msrb.mxu0 %v185_v63  ;;  %v534_v11 = vand.u32 4294901760, %v1243_v14  ;;  %v433_v63 = vld [vmem:[#allocation7 + $0x18] sm:$0xff]  ;;  %v1276_v47 = vsub.f32 %v436_v48, %v1256_v57  ;;  %v529_v58 = vsub.f32 %v1232_v41, %v528_v10  ;;  %v518_v33 = vand.u32 4294901760, %v517_v19 }
  0x44   :  { %501 = vmatpush.msrb.mxu3 %v500_v53  ;;  %v540_v53 = vand.u32 4294901760, %v1269_v51  ;;  %v1289_v48 = vsub.f32 %v435_v22, %v1262_v5  ;;  %v1291_v24 = vand.u32 4294901760, %v433_v63  ;;  %464 = vmatpush.msrb.mxu2 %v1215_v30 }
  0x45   :  { %405 = vmatpush.msrb.mxu1 %v987_v17  ;;  %366 = vmatpush.msrb.mxu0 %v191_v8  ;;  %v1278_v17 = vand.u32 4294901760, %v434_v55  ;;  %v432_v8 = vld [vmem:[#allocation7 + $0x10] sm:$0xff] }
  0x46   :  { %507 = vmatpush.msrb.mxu3 %v506_v3  ;;  %v546_v3 = vand.u32 4294901760, %v1276_v47  ;;  %v1304_v19 = vand.u32 4294901760, %v432_v8  ;;  %466 = vmatpush.msrb.mxu2 %v1254_v45 }
  0x47   :  { %407 = vmatpush.msrb.mxu1 %v996_v20  ;;  %370 = vmatpush.msrb.mxu0 %v197_v31  ;;  %v535_v20 = vsub.f32 %v1243_v14, %v534_v11  ;;  %v524_v31 = vand.u32 4294901760, %v523_v43  ;;  %v1302_v22 = vsub.f32 %v434_v55, %v1278_v17  ;;  %v1315_v55 = vsub.f32 %v433_v63, %v1291_v24 }
  0x48   :  { %513 = vmatpush.msrb.mxu3 %v512_v28  ;;  %v552_v28 = vand.u32 4294901760, %v1289_v48  ;;  %v1317_v43 = vand.u32 4294901760, %v431_v0  ;;  %v547_v21 = vsub.f32 %v1276_v47, %v546_v3  ;;  %468 = vmatpush.msrb.mxu2 %v1256_v57  ;;  %v1328_v63 = vsub.f32 %v432_v8, %v1304_v19 }
  0x49   :  { %409 = vmatpush.msrb.mxu1 %v1022_v32  ;;  %374 = vmatpush.msrb.mxu0 %v203_v36  ;;  %v530_v32 = vand.u32 4294901760, %v529_v58  ;;  %v541_v36 = vsub.f32 %v1269_v51, %v540_v53  ;;  %v1330_v58 = vand.u32 4294901760, %v430_v1 }
  0x4a   :  { %519 = vmatpush.msrb.mxu3 %v518_v33  ;;  %v553_v40 = vsub.f32 %v1289_v48, %v552_v28  ;;  %v1341_v8 = vsub.f32 %v431_v0, %v1317_v43  ;;  %470 = vmatpush.msrb.mxu2 %v1262_v5 }
  0x4b   :  { %411 = vmatpush.msrb.mxu1 %v1041_v44  ;;  %378 = vmatpush.msrb.mxu0 %v209_v49  ;;  %v536_v44 = vand.u32 4294901760, %v535_v20  ;;  %v558_v49 = vand.u32 4294901760, %v1302_v22  ;;  %v1351_v33 = vsub.f32 %v430_v1, %v1330_v58 }
  0x4c   :  { %525 = vmatpush.msrb.mxu3 %v524_v31  ;;  %v576_v0 = vand.u32 4294901760, %v1341_v8  ;;  %472 = vmatpush.msrb.mxu2 %v1278_v17 }
  0x4d   :  { %413 = vmatpush.msrb.mxu1 %v1046_v46  ;;  %382 = vmatpush.msrb.mxu0 %v215_v56  ;;  %v542_v46 = vand.u32 4294901760, %v541_v36  ;;  %v564_v56 = vand.u32 4294901760, %v1315_v55  ;;  %v559_v50 = vsub.f32 %v1302_v22, %v558_v49 }
  0x4e   :  { %531 = vmatpush.msrb.mxu3 %v530_v32  ;;  %v582_v32 = vand.u32 4294901760, %v1351_v33  ;;  %474 = vmatpush.msrb.mxu2 %v1291_v24  ;;  %v577_v1 = vsub.f32 %v1341_v8, %v576_v0 }
  0x4f   :  { %415 = vmatpush.msrb.mxu1 %v1058_v52  ;;  %386 = vmatpush.msrb.mxu0 %v221_v2  ;;  %v548_v52 = vand.u32 4294901760, %v547_v21  ;;  %v570_v2 = vand.u32 4294901760, %v1328_v63  ;;  %v565_v20 = vsub.f32 %v1315_v55, %v564_v56  ;;  %v560_v31 = vand.u32 4294901760, %v559_v50 }
  0x50   :  { %388 = vmatmul.f32.vlgmr.msrb.gmra.mxu0 %v1111_v35  ;;  %537 = vmatpush.msrb.mxu3 %v536_v44 }
  0x51   :  { %417 = vmatpush.msrb.mxu1 %v1060_v54  ;;  %593 = vmatpush.msra.mxu0 %v1192_v27  ;;  %v554_v54 = vand.u32 4294901760, %v553_v40 }
  0x52   :  { %543 = vmatpush.msrb.mxu3 %v542_v46  ;;  %476 = vmatpush.msrb.mxu2 %v1304_v19 }
  0x53   :  { %419 = vmatpush.msrb.mxu1 %v1075_v60  ;;  %596 = vmatpush.msra.mxu0 %v1195_v61  ;;  %v571_v60 = vsub.f32 %v1328_v63, %v570_v2 }
  0x54   :  { %549 = vmatpush.msrb.mxu3 %v548_v52  ;;  %478 = vmatpush.msrb.mxu2 %v1317_v43 }
  0x55   :  { %421 = vmatpush.msrb.mxu1 %v1094_v12  ;;  %599 = vmatpush.msra.mxu0 %v1198_v62  ;;  %v566_v12 = vand.u32 4294901760, %v565_v20  ;;  %v572_v36 = vand.u32 4294901760, %v571_v60 }
  0x56   :  { %555 = vmatpush.msrb.mxu3 %v554_v54  ;;  %480 = vmatpush.msrb.mxu2 %v1330_v58 }
  0x57   :  { %423 = vmatpush.msrb.mxu1 %v1108_v34  ;;  %602 = vmatpush.msra.mxu0 %v1203_v7  ;;  %v583_v34 = vsub.f32 %v1351_v33, %v582_v32 }
  0x58   :  { %425 = vmatmul.f32.vlgmr.msrb.gmra.mxu1 %v1111_v35  ;;  %561 = vmatpush.msrb.mxu3 %v560_v31  ;;  %v578_v35 = vand.u32 4294901760, %v577_v1 }
  0x59   :  { %646 = vmatpush.msra.mxu1 %v1175_v15  ;;  %605 = vmatpush.msra.mxu0 %v1207_v4  ;;  %v584_v44 = vand.u32 4294901760, %v583_v34 }
  0x5a   :  { %567 = vmatpush.msrb.mxu3 %v566_v12  ;;  %687 = vmatpush.msra.mxu2 %v492_v25 }
  0x5b   :  { %648 = vmatpush.msra.mxu1 %v1177_v23  ;;  %608 = vmatpush.msra.mxu0 %v1220_v38 }
  0x5c   :  { %573 = vmatpush.msrb.mxu3 %v572_v36  ;;  %691 = vmatpush.msra.mxu2 %v498_v39 }
  0x5d   :  { %650 = vmatpush.msra.mxu1 %v1179_v16  ;;  %611 = vmatpush.msra.mxu0 %v1232_v41 }
  0x5e   :  { %579 = vmatpush.msrb.mxu3 %v578_v35  ;;  %695 = vmatpush.msra.mxu2 %v504_v13 }
  0x5f   :  { %652 = vmatpush.msra.mxu1 %v1182_v18  ;;  %614 = vmatpush.msra.mxu0 %v1243_v14 }
  0x60   :  { %585 = vmatpush.msrb.mxu3 %v584_v44  ;;  %699 = vmatpush.msra.mxu2 %v510_v37 }
  0x61   :  { %654 = vmatpush.msra.mxu1 %v1184_v26  ;;  %617 = vmatpush.msra.mxu0 %v1269_v51 }
  0x62   :  { %754 = vmatpush.msra.mxu3 %v1175_v15  ;;  %703 = vmatpush.msra.mxu2 %v516_v9  ;;  %v816_v15 = vld [vmem:[%s1467_s2] ss:$0 sm:$0xff] }
  0x63   :  { %656 = vmatpush.msra.mxu1 %v1186_v59  ;;  %620 = vmatpush.msra.mxu0 %v1276_v47  ;;  %v817_v9 = vld [vmem:[%s1469_s4] ss:$0 sm:$0xff] }
  0x64   :  { %756 = vmatpush.msra.mxu3 %v1177_v23  ;;  %707 = vmatpush.msra.mxu2 %v522_v42 }
  0x65   :  { %658 = vmatpush.msra.mxu1 %v1200_v6  ;;  %623 = vmatpush.msra.mxu0 %v1289_v48 }
  0x66   :  { %758 = vmatpush.msra.mxu3 %v1179_v16  ;;  %711 = vmatpush.msra.mxu2 %v528_v10 }
  0x67   :  { %660 = vmatpush.msra.mxu1 %v1215_v30  ;;  %626 = vmatpush.msra.mxu0 %v1302_v22 }
  0x68   :  { %760 = vmatpush.msra.mxu3 %v1182_v18  ;;  %715 = vmatpush.msra.mxu2 %v534_v11 }
  0x69   :  { %662 = vmatpush.msra.mxu1 %v1254_v45  ;;  %629 = vmatpush.msra.mxu0 %v1315_v55 }
  0x6a   :  { %762 = vmatpush.msra.mxu3 %v1184_v26  ;;  %719 = vmatpush.msra.mxu2 %v540_v53 }
  0x6b   :  { %664 = vmatpush.msra.mxu1 %v1256_v57  ;;  %632 = vmatpush.msra.mxu0 %v1328_v63 }
  0x6c   :  { %764 = vmatpush.msra.mxu3 %v1186_v59  ;;  %723 = vmatpush.msra.mxu2 %v546_v3 }
  0x6d   :  { %666 = vmatpush.msra.mxu1 %v1262_v5  ;;  %635 = vmatpush.msra.mxu0 %v1341_v8 }
  0x6e   :  { %766 = vmatpush.msra.mxu3 %v1200_v6  ;;  %727 = vmatpush.msra.mxu2 %v552_v28 }
  0x6f   :  { %668 = vmatpush.msra.mxu1 %v1278_v17  ;;  %638 = vmatpush.msra.mxu0 %v1351_v33 }
  0x70   :  { %768 = vmatpush.msra.mxu3 %v1215_v30  ;;  %731 = vmatpush.msra.mxu2 %v558_v49 }
  0x71   :  { %670 = vmatpush.msra.mxu1 %v1291_v24 }
  0x72   :  { %770 = vmatpush.msra.mxu3 %v1254_v45  ;;  %735 = vmatpush.msra.mxu2 %v564_v56 }
  0x73   :  { %672 = vmatpush.msra.mxu1 %v1304_v19 }
  0x74   :  { %772 = vmatpush.msra.mxu3 %v1256_v57  ;;  %739 = vmatpush.msra.mxu2 %v570_v2 }
  0x75   :  { %674 = vmatpush.msra.mxu1 %v1317_v43 }
  0x76   :  { %774 = vmatpush.msra.mxu3 %v1262_v5  ;;  %743 = vmatpush.msra.mxu2 %v576_v0 }
  0x77   :  { %676 = vmatpush.msra.mxu1 %v1330_v58 }
  0x78   :  { %776 = vmatpush.msra.mxu3 %v1278_v17  ;;  %747 = vmatpush.msra.mxu2 %v582_v32 }
  0x7a   :  { %778 = vmatpush.msra.mxu3 %v1291_v24 }
  0x7c   :  { %780 = vmatpush.msra.mxu3 %v1304_v19 }
  0x7e   :  { %782 = vmatpush.msra.mxu3 %v1317_v43 }
  0x80   :  { %784 = vmatpush.msra.mxu3 %v1330_v58 }
  0xb1   :  { %v126_v23 = vpop.f32.mrf.mxu0 }
  0xb2   :  { %v127_v16 = vadd.f32 %v816_v15, %v126_v23 }
  0xb5   :  { %v227_v18 = vpop.f32.mrf.mxu1  ;;  %v320_v61 = vpop.f32.mrf.mxu3 }
  0xb6   :  { %v228_v26 = vadd.f32 %v227_v18, %v127_v16 }
  0xb7   :  { %v281_v59 = vpop.f32.mrf.mxu2 }
  0xb8   :  { %v282_v27 = vadd.f32 %v281_v59, %v228_v26 }
  0xba   :  { %v321_v62 = vadd.f32 %v320_v61, %v282_v27 }
  0xcd   :  { %v389_v6 = vpop.f32.mrf.mxu0 }
  0xce   :  { %v390_v7 = vadd.f32 %v389_v6, %v321_v62 }
  0xd5   :  { %v426_v4 = vpop.f32.mrf.mxu1 }
  0xd6   :  { %v427_v25 = vadd.f32 %v426_v4, %v390_v7 }
  0xd8   :  { %v429_v39 = vmax.f32 %v427_v25, 0.0 }
  0xda   :  { %v481_v13 = vand.u32 4294901760, %v429_v39 }
  0xdc   :  { %v482_v30 = vsub.f32 %v429_v39, %v481_v13  ;;  %587 = vmatmul.f32.vlgmr.msrb.gmra.mxu3 %v481_v13 }
  0xde   :  { %641 = vmatmul.f32.vlgmr.msra.gmra.mxu0 %v482_v30  ;;  %v483_v37 = vand.u32 4294901760, %v482_v30 }
  0xe0   :  { %680 = vmatmul.f32.vlgmr.msra.gmra.mxu1 %v483_v37  ;;  %v484_v38 = vsub.f32 %v482_v30, %v483_v37 }
  0xe2   :  { %v485_v41 = vand.u32 4294901760, %v484_v38 }
  0xe4   :  { %486 = vmatmul.f32.vlgmr.msrb.gmra.mxu2 %v485_v41  ;;  %786 = vmatmul.f32.vlgmr.msra.gmra.mxu3 %v481_v13 }
  0xec   :  { %749 = vmatmul.f32.vlgmr.msra.gmra.mxu2 %v481_v13 }
 0x15b   :  { %v642_v57 = vpop.f32.mrf.mxu0 }
 0x15d   :  { %v681_v11 = vpop.f32.mrf.mxu1 }
 0x15f   :  { %v588_v14 = vpop.f32.mrf.mxu3 }
 0x167   :  { %v487_v42 = vpop.f32.mrf.mxu2  ;;  %v787_v53 = vpop.f32.mrf.mxu3 }
 0x168   :  { %v488_v10 = vadd.f32 %v817_v9, %v487_v42 }
 0x16a   :  { %v589_v45 = vadd.f32 %v588_v14, %v488_v10 }
 0x16c   :  { %v643_v5 = vadd.f32 %v642_v57, %v589_v45 }
 0x16e   :  { %v682_v51 = vadd.f32 %v681_v11, %v643_v5 }
 0x16f   :  { %v750_v47 = vpop.f32.mrf.mxu2 }
 0x170   :  { %v751_v17 = vadd.f32 %v750_v47, %v682_v51 }
 0x172   :  { %v788_v48 = vadd.f32 %v787_v53, %v751_v17 }
 0x174   :  { %v790_v24 = vadd.f32 %v788_v48, %v1101_v29 }
 0x176   :  { %791 = vst [vmem:[#allocation8] sm:$0xff] %v790_v24 }
 0x177   :  { %802 = dma.vmem_to_hbm [thread:$0]  %s798_s11, 128, %s800_s14, [#allocation4]  }
 0x178   :  { %918 = dma.done.wait [#allocation4], 128  }
 0x179   :  { %919 = vsyncadd [#allocation4], 4294967168 }
 0x17a   :  { %807 = vsyncpa [#allocation3], 1 }
 0x17b   :  { %808 = vsyncpa [#allocation6], 1 }
 0x17c   :  { %809 = vsyncpa [#allocation4], 1 }

</bundles_post_ra>
